<compile_context>
chip_gen: v6e
topology: v6e:2x2x1
jax: 0.10.0
libtpu: 0.0.40
codegen_flags: <defaults>
</compile_context>

<pallas_src>
import jax
import jax.numpy as jnp
from jax.experimental import pallas as pl
from jax.experimental.pallas import tpu as pltpu


def _round_up(n, m):
    return ((n + m - 1) // m) * m


def mlp_kernel(x_ref, w1_ref, b1_ref, w2_ref, b2_ref, o_ref):
    # Hidden layer: ReLU(x @ W1 + b1)  (MXU matmul + VPU elementwise).
    h = jnp.dot(x_ref[...], w1_ref[...], preferred_element_type=jnp.float32)
    h = jnp.maximum(h + b1_ref[...], 0.0)
    # Output layer: h @ W2 + b2 — W2 is padded only on the hidden dim, so the
    # result already has the true nb_actions width (no padded writeback).
    y = jnp.dot(h, w2_ref[...], preferred_element_type=jnp.float32)
    o_ref[...] = (y + b2_ref[...]).astype(o_ref.dtype)


def pad_params(w1, b1, w2, b2, *, weight_dtype=jnp.float32):
    """Pad the hidden dim to lane width (128) ONCE, outside the forward pass.

    Zero padding is exact for Linear->ReLU->Linear: padded hidden units give
    ReLU(0 + 0) = 0 and the matching zero rows of W2 contribute nothing.
    The output dim is NOT padded (kept at nb_actions) so HBM writeback is
    minimal.  Optionally cast weights to bf16 (dots still accumulate in f32).
    """
    nb_obs, hidden = w1.shape
    nb_actions = w2.shape[1]
    hp = _round_up(hidden, 128)
    w1p = jnp.zeros((nb_obs, hp), weight_dtype).at[:, :hidden].set(
        w1.astype(weight_dtype))
    b1p = jnp.zeros((1, hp), jnp.float32).at[:, :hidden].set(
        b1.reshape(1, -1).astype(jnp.float32))
    w2p = jnp.zeros((hp, nb_actions), weight_dtype).at[:hidden, :].set(
        w2.astype(weight_dtype))
    b2p = b2.reshape(1, -1).astype(jnp.float32)
    return w1p, b1p, w2p, b2p


def mlp_forward(x, params, *, tile_m=2048):
    """x: [batch, nb_obs] (fp32 or bf16); params from pad_params().

    Returns [batch, nb_actions] fp32, matching PyTorch Linear->ReLU->Linear.
    """
    w1p, b1p, w2p, b2p = params
    batch, nb_obs = x.shape
    hp = w1p.shape[1]
    nb_actions = w2p.shape[1]

    param_bytes = sum(int(a.size) * a.dtype.itemsize for a in params)
    cost = pl.CostEstimate(
        flops=2 * batch * (nb_obs * hp + hp * nb_actions),
        transcendentals=0,
        bytes_accessed=int(x.size) * x.dtype.itemsize
        + 4 * batch * nb_actions
        + param_bytes,
    )

    if batch <= tile_m:
        # Small batch: single invocation, no grid, everything VMEM-resident.
        # (At tiny batch this is pure dispatch overhead; a plain XLA dot chain
        # is equally valid here — kept as a Pallas call for uniformity.)
        vmem_spec = pl.BlockSpec(memory_space=pltpu.MemorySpace.VMEM)
        out = pl.pallas_call(
            mlp_kernel,
            out_shape=jax.ShapeDtypeStruct((batch, nb_actions), jnp.float32),
            in_specs=[vmem_spec] * 5,
            out_specs=vmem_spec,
            cost_estimate=cost,
        )(x, w1p, b1p, w2p, b2p)
    else:
        # Large batch: tile only the batch axis over the UNPADDED x; the
        # ~70 KiB of padded weights stay VMEM-resident across all tiles
        # (constant index_map).  The last partial block's out-of-bounds rows
        # are clipped on write by Pallas; rows are independent so this is
        # exact.  "parallel" lets v7x shard the batch axis across both TCs.
        grid = (pl.cdiv(batch, tile_m),)
        out = pl.pallas_call(
            mlp_kernel,
            out_shape=jax.ShapeDtypeStruct((batch, nb_actions), jnp.float32),
            grid=grid,
            in_specs=[
                pl.BlockSpec((tile_m, nb_obs), lambda i: (i, 0)),
                pl.BlockSpec((nb_obs, hp), lambda i: (0, 0)),
                pl.BlockSpec((1, hp), lambda i: (0, 0)),
                pl.BlockSpec((hp, nb_actions), lambda i: (0, 0)),
                pl.BlockSpec((1, nb_actions), lambda i: (0, 0)),
            ],
            out_specs=pl.BlockSpec((tile_m, nb_actions), lambda i: (i, 0)),
            compiler_params=pltpu.CompilerParams(
                dimension_semantics=("parallel",),
            ),
            cost_estimate=cost,
        )(x, w1p, b1p, w2p, b2p)

    return out


def init_params(key, nb_obs, hidden, nb_actions):
    # Mimics nn.Linear's uniform(-1/sqrt(fan_in), 1/sqrt(fan_in)) init.
    k1, k2, k3, k4 = jax.random.split(key, 4)
    lim1 = 1.0 / jnp.sqrt(nb_obs)
    lim2 = 1.0 / jnp.sqrt(hidden)
    w1 = jax.random.uniform(k1, (nb_obs, hidden), jnp.float32, -lim1, lim1)
    b1 = jax.random.uniform(k2, (hidden,), jnp.float32, -lim1, lim1)
    w2 = jax.random.uniform(k3, (hidden, nb_actions), jnp.float32, -lim2, lim2)
    b2 = jax.random.uniform(k4, (nb_actions,), jnp.float32, -lim2, lim2)
    return w1, b1, w2, b2


def _ref(x, w1, b1, w2, b2):
    return jnp.maximum(x @ w1 + b1.reshape(1, -1), 0.0) @ w2 + b2.reshape(1, -1)


if __name__ == "__main__":
    key = jax.random.PRNGKey(0)
    k_x, k_p, k_big = jax.random.split(key, 3)

    # Shapes implied by the module: obs-dim inputs, default layers=(64,),
    # action-dim outputs.
    batch = 2
    nb_obs = 8         # env.observation_space.shape[0]
    hidden = 64        # default layers=(64,)
    nb_actions = 4     # env.action_space.shape[0]

    w1, b1, w2, b2 = init_params(k_p, nb_obs, hidden, nb_actions)
    params = pad_params(w1, b1, w2, b2)          # pad ONCE, outside forward

    # Small-batch path (no grid, fully VMEM-resident, unpadded output).
    x = jax.random.normal(k_x, (batch, nb_obs), jnp.float32)
    out = mlp_forward(x, params)
    jax.block_until_ready(out)
    ref = _ref(x, w1, b1, w2, b2)
    assert out.shape == (batch, nb_actions)
    assert jnp.allclose(out, ref, atol=1e-5, rtol=1e-5)

    # Batched path: grid over batch tiles on the UNPADDED x, uneven batch
    # (300 % 128 != 0) exercises the clipped partial last block.
    big_batch = 300
    xb = jax.random.normal(k_big, (big_batch, nb_obs), jnp.float32)
    out_b = mlp_forward(xb, params, tile_m=128)
    jax.block_until_ready(out_b)
    ref_b = _ref(xb, w1, b1, w2, b2)
    assert out_b.shape == (big_batch, nb_actions)
    assert jnp.allclose(out_b, ref_b, atol=1e-4, rtol=1e-4)

    # Optional bf16-input path (halves streamed x/weight bytes; f32 accum).
    params_bf16 = pad_params(w1, b1, w2, b2, weight_dtype=jnp.bfloat16)
    xb_bf16 = xb.astype(jnp.bfloat16)
    out_bf = mlp_forward(xb_bf16, params_bf16, tile_m=128)
    jax.block_until_ready(out_bf)
    assert out_bf.shape == (big_batch, nb_actions)
    assert jnp.allclose(out_bf, ref_b, atol=1e-1, rtol=1e-1)

    print("KERNEL_OK")
</pallas_src>

<mosaic_0001>
module attributes {stable_mosaic.version = 11 : i64} {
  func.func @mlp_kernel(%arg0: memref<2x8xf32, #tpu.memory_space<vmem>>, %arg1: memref<8x128xf32, #tpu.memory_space<vmem>>, %arg2: memref<1x128xf32, #tpu.memory_space<vmem>>, %arg3: memref<128x4xf32, #tpu.memory_space<vmem>>, %arg4: memref<1x4xf32, #tpu.memory_space<vmem>>, %arg5: memref<2x4xf32, #tpu.memory_space<vmem>>) attributes {dimension_semantics = [], scalar_prefetch = 0 : i64, scratch_operands = 0 : i64, tpu.core_type = #tpu.core_type<tc>} {
    %c0 = arith.constant 0 : index
    %c0_0 = arith.constant 0 : index
    %0 = vector.load %arg0[%c0, %c0_0] : memref<2x8xf32, #tpu.memory_space<vmem>>, vector<2x8xf32>
    %c0_1 = arith.constant 0 : index
    %c0_2 = arith.constant 0 : index
    %1 = vector.load %arg1[%c0_1, %c0_2] : memref<8x128xf32, #tpu.memory_space<vmem>>, vector<8x128xf32>
    %cst = arith.constant dense<0.000000e+00> : vector<2x128xf32>
    %2 = tpu.matmul %0, %1, %cst {dimension_numbers = #tpu.dot_dimension_numbers<[1], [0], [0], [1], [0, 0, 1, 1], [], []>} : vector<2x8xf32>, vector<8x128xf32>, vector<2x128xf32> -> vector<2x128xf32>
    %c0_3 = arith.constant 0 : index
    %c0_4 = arith.constant 0 : index
    %3 = vector.load %arg2[%c0_3, %c0_4] : memref<1x128xf32, #tpu.memory_space<vmem>>, vector<1x128xf32>
    %4 = vector.broadcast %3 : vector<1x128xf32> to vector<2x128xf32>
    %5 = arith.addf %2, %4 : vector<2x128xf32>
    %cst_5 = arith.constant 0.000000e+00 : f32
    %6 = vector.broadcast %cst_5 : f32 to vector<2x128xf32>
    %7 = arith.maximumf %5, %6 : vector<2x128xf32>
    %c0_6 = arith.constant 0 : index
    %c0_7 = arith.constant 0 : index
    %8 = vector.load %arg3[%c0_6, %c0_7] : memref<128x4xf32, #tpu.memory_space<vmem>>, vector<128x4xf32>
    %cst_8 = arith.constant dense<0.000000e+00> : vector<2x4xf32>
    %9 = tpu.matmul %7, %8, %cst_8 {dimension_numbers = #tpu.dot_dimension_numbers<[1], [0], [0], [1], [0, 0, 1, 1], [], []>} : vector<2x128xf32>, vector<128x4xf32>, vector<2x4xf32> -> vector<2x4xf32>
    %c0_9 = arith.constant 0 : index
    %c0_10 = arith.constant 0 : index
    %10 = vector.load %arg4[%c0_9, %c0_10] : memref<1x4xf32, #tpu.memory_space<vmem>>, vector<1x4xf32>
    %11 = vector.broadcast %10 : vector<1x4xf32> to vector<2x4xf32>
    %12 = arith.addf %9, %11 : vector<2x4xf32>
    %c0_11 = arith.constant 0 : index
    %c0_12 = arith.constant 0 : index
    %13 = vector.load %arg5[%c0_11, %c0_12] : memref<2x4xf32, #tpu.memory_space<vmem>>, vector<2x4xf32>
    tpu.vector_store %arg5[%c0_11, %c0_12], %12 {strides = array<i32>} : memref<2x4xf32, #tpu.memory_space<vmem>>, vector<2x4xf32>,
    return
  }
}

</mosaic_0001>

<bundles_post_ra>
// kernel: tpu_custom_call.1
= control target key start
LH: loop header
LB: loop body
LE: loop exit
PB: predicated region body
PF: predicated region fallthrough
CT: control target
= control target key end

     0   :  { %vm30_vm0 = vcmask 64512   ;;  %v301_v2 = vmov 0.0   ;;  %vm302_vm1 = vmmov 0   ;;  %s397_s0 = inlined_call_operand.vmem [shape: f32[2,8], index: 0, kind: input, shape index: {}]   ;;  %s398_s1 = inlined_call_operand.vmem [shape: f32[8,128], index: 1, kind: input, shape index: {}]   ;;  %s399_s2 = inlined_call_operand.vmem [shape: f32[1,128], index: 2, kind: input, shape index: {}]   ;;  %s400_s3 = inlined_call_operand.vmem [shape: f32[128,4], index: 3, kind: input, shape index: {}]   ;;  %s401_s4 = inlined_call_operand.vmem [shape: f32[1,4], index: 4, kind: input, shape index: {}]   ;;  %s402_s5 = inlined_call_operand.hbm [shape: f32[2,4], index: 5, kind: output, shape index: {}]  }
   0x1   :  { %v22_v0 = vld [vmem:[%s398_s1] sm:$0xff]  ;;  %236 = vmatprep.subr.mxu0 %v301_v2  ;;  %238 = vmatprep.mubr.msk.f32.mxu0 %vm302_vm1, %v301_v2  ;;  %v120_v3 = vld [vmem:[%s400_s3 + $0x78] sm:$0xff]  ;;  %v119_v4 = vld [vmem:[%s400_s3 + $0x70] sm:$0xff] }
   0x2   :  { %v21_v1 = vld [vmem:[%s397_s0] sm:$0x3]  ;;  %237 = vmatpush3.msra.mxu0 %v22_v0  ;;  %241 = vmatprep.subr.mxu1 %v301_v2  ;;  %v118_v5 = vld [vmem:[%s400_s3 + $0x68] sm:$0xff] }
   0x3   :  { %239 = vmatmul.mubr.msk.f32.vlgmr.msra.gmra.mxu0 %vm30_vm0, %v21_v1  ;;  %242 = vmatpush3.msra.mxu1 %v120_v3 }
   0x4   :  { %243 = vmatprep.subr.mxu1 %v301_v2  ;;  %273 = vmatprep.mubr.msk.f32.mxu1 %vm302_vm1, %v301_v2 }
   0x5   :  { %244 = vmatpush3.msra.mxu1 %v119_v4 }
   0x6   :  { %10 = vsyncpa [#allocation3], 0  ;;  %245 = vmatprep.subr.mxu1 %v301_v2  ;;  %v117_v6 = vld [vmem:[%s400_s3 + $0x60] sm:$0xff]  ;;  %v116_v7 = vld [vmem:[%s400_s3 + $0x58] sm:$0xff]  ;;  %s303_s29 = smov [#allocation2]   ;;  %vm198_vm2 = vcmask 25600  }
   0x7   :  { %246 = vmatpush3.msra.mxu1 %v118_v5  ;;  %v115_v8 = vld [vmem:[%s400_s3 + $0x50] sm:$0xff]  ;;  %v114_v9 = vld [vmem:[%s400_s3 + $0x48] sm:$0xff]  ;;  %v113_v10 = vld [vmem:[%s400_s3 + $0x40] sm:$0xff]  ;;  %s206_s30 = sshll.u32 %s303_s29, 4  ;;  %s207_s30 = int_to_ptr.vmem [resolvable:$true] %s206_s30 }
   0x8   :  { %247 = vmatprep.subr.mxu1 %v301_v2  ;;  %v112_v11 = vld [vmem:[%s400_s3 + $0x38] sm:$0xff]  ;;  %v111_v12 = vld [vmem:[%s400_s3 + $0x30] sm:$0xff]  ;;  %v110_v13 = vld [vmem:[%s400_s3 + $0x28] sm:$0xff]  ;;  %p284_p1 = scmp.lt.s32.totalorder %s207_s30, %s207_s30 }
   0x9   :  { %248 = vmatpush3.msra.mxu1 %v117_v6  ;;  %v109_v14 = vld [vmem:[%s400_s3 + $0x20] sm:$0xff]  ;;  %v108_v15 = vld [vmem:[%s400_s3 + $0x18] sm:$0xff]  ;;  %v107_v16 = vld [vmem:[%s400_s3 + $0x10] sm:$0xff] }
   0xa   :  { %249 = vmatprep.subr.mxu1 %v301_v2  ;;  %v106_v17 = vld [vmem:[%s400_s3 + $0x8] sm:$0xff]  ;;  %v105_v18 = vld [vmem:[%s400_s3] sm:$0xff]  ;;  %s279_s3 = scalar_lea.vmem %s207_s30, 32 }
   0xb   :  { %250 = vmatpush3.msra.mxu1 %v116_v7  ;;  %v214_v19 = vld [vmem:[%s399_s2] ss:$0 sm:$0xff]  ;;  %p280_p0 = scmp.ne.s32.totalorder %s207_s30, %s279_s3  ;;  %p285_p2 = scmp.lt.s32.totalorder %s279_s3, %s279_s3 }
   0xc   :  { %251 = vmatprep.subr.mxu1 %v301_v2  ;;  %v216_v24 = vld [vmem:[%s401_s4] ss:$0 sm:$0xff] }
   0xd   :  { %252 = vmatpush3.msra.mxu1 %v115_v8  ;;  %p286_p3 = por %p285_p2, %p284_p1 }
   0xe   :  { %253 = vmatprep.subr.mxu1 %v301_v2 }
   0xf   :  { %254 = vmatpush3.msra.mxu1 %v114_v9  ;;  %p287_p4 = pnand %p286_p3, %p280_p0 }
  0x10   :  { %255 = vmatprep.subr.mxu1 %v301_v2 }
  0x11   :  { %256 = vmatpush3.msra.mxu1 %v113_v10 }
  0x12   :  { %257 = vmatprep.subr.mxu1 %v301_v2 }
  0x13   :  { %258 = vmatpush3.msra.mxu1 %v112_v11 }
  0x14   :  { %259 = vmatprep.subr.mxu1 %v301_v2 }
  0x15   :  { %260 = vmatpush3.msra.mxu1 %v111_v12 }
  0x16   :  { %261 = vmatprep.subr.mxu1 %v301_v2 }
  0x17   :  { %262 = vmatpush3.msra.mxu1 %v110_v13 }
  0x18   :  { %263 = vmatprep.subr.mxu1 %v301_v2 }
  0x19   :  { %264 = vmatpush3.msra.mxu1 %v109_v14 }
  0x1a   :  { %265 = vmatprep.subr.mxu1 %v301_v2 }
  0x1b   :  { %266 = vmatpush3.msra.mxu1 %v108_v15 }
  0x1c   :  { %267 = vmatprep.subr.mxu1 %v301_v2 }
  0x1d   :  { %268 = vmatpush3.msra.mxu1 %v107_v16 }
  0x1e   :  { %269 = vmatprep.subr.mxu1 %v301_v2 }
  0x1f   :  { %270 = vmatpush3.msra.mxu1 %v106_v17 }
  0x20   :  { %271 = vmatprep.subr.mxu1 %v301_v2 }
  0x21   :  { %272 = vmatpush3.msra.mxu1 %v105_v18 }
  0xc3   :  { %v100_v20 = vpop.f32.mrf.mxu0 }
  0xc4   :  { %v101_v21 = vadd.f32 %v214_v19, %v100_v20 }
  0xc5   :  { %v240_v22 = vpop.f32.mrf.mxu0 }
  0xc6   :  { %v104_v23 = vmax.f32 %v101_v21, 0.0 }
  0xc8   :  { %274 = vmatmul.mubr.f32.vlgmr.msra.gmra.mxu1 %v104_v23 }
 0x188   :  { %v194_v25 = vpop.f32.mrf.mxu1 }
 0x189   :  { %v195_v26 = vadd.f32 %v216_v24, %v194_v25 }
 0x18a   :  { %v275_v27 = vpop.f32.mrf.mxu1 }
 0x18b   :  { %199 = vst.msk [vmem:[#allocation2] sm:$0x3] %vm198_vm2, %v195_v26 }
 0x18c   :  { %290 = shalt.err (!%p287_p4)
}
 0x18d   :  { %209 = dma.vmem_to_hbm [thread:$0]  %s207_s30, 32, %s402_s5, [#allocation3]  }
 0x18e   :  { %299 = dma.done.wait [#allocation3], 32  }
 0x18f   :  { %300 = vsyncadd [#allocation3], 4294967264 }
 0x190   :  { %213 = vsyncpa [#allocation3], 1 }

</bundles_post_ra>
